<compile_context>
chip_gen: v7x
topology: tpu7x:2x2x1
jax: 0.10.0
libtpu: 0.0.40
codegen_flags: <defaults>
</compile_context>

<pallas_src>
import functools
import math

import jax
import jax.numpy as jnp
from jax.experimental import pallas as pl
from jax.experimental.pallas import tpu as pltpu


def glucose_kernel(state_ref, action_ref, w1s_ref, w1a_ref, b1_ref,
                   wh_ref, bh_ref, z_ref, out_ref, *, n_out):
    # fc_layer1 + ReLU -- the two small dots accumulate into the same f32
    # result (replaces the wrapper-side concat of [state, action]).
    h = (jnp.dot(state_ref[...], w1s_ref[...], preferred_element_type=jnp.float32)
         + jnp.dot(action_ref[...], w1a_ref[...], preferred_element_type=jnp.float32))
    h = jnp.maximum(h + b1_ref[...], 0.0)

    # Fused + zero-padded heads: one (H, 128) matmul -> a full lane-dense vreg.
    # Lanes [0, O) hold mu_pre, [O, 2O) hold sigma_pre, remaining lanes are 0.
    pre = jnp.dot(h, wh_ref[...], preferred_element_type=jnp.float32) + bh_ref[...]

    # cgm_mu = tanh(Linear)
    mu = jnp.tanh(pre[:, 0:n_out])

    # cgm_sigma = softplus(Linear + 1e-5)  (numerically stable softplus)
    s_pre = pre[:, n_out:2 * n_out] + 1e-5
    sig = jnp.maximum(s_pre, 0.0) + jnp.log1p(jnp.exp(-jnp.abs(s_pre)))

    # Reparameterized sample with a single scalar z (as in the PyTorch module,
    # Normal(0,1).sample() is scalar and shared across batch/outputs), clamped.
    z = z_ref[0, 0]
    cgm = jnp.clip(mu + sig * z, -1.0, 1.0)

    # Build the whole lane-dense slab as a VALUE and write it with ONE unmasked
    # full-width store (no zero-fill store, no sub-128-lane masked stores):
    #   lanes [0, O) = mu, [O, 2O) = sigma, [2O, 3O) = cgm, rest = 0.
    parts = [mu.astype(out_ref.dtype),
             sig.astype(out_ref.dtype),
             cgm.astype(out_ref.dtype)]
    pad_w = out_ref.shape[1] - 3 * n_out
    if pad_w > 0:
        parts.append(jnp.zeros((mu.shape[0], pad_w), out_ref.dtype))
    out_ref[...] = jnp.concatenate(parts, axis=1)


def glucose_forward(extract_state, action, params, z):
    """Single fused pallas_call; returns (cgm_mu, cgm_sigma, cgm)."""
    state = extract_state.astype(jnp.float32)
    act = action.astype(jnp.float32)
    B, F = state.shape
    A = act.shape[1]
    H = params["w1_state"].shape[1]           # last_hidden
    O = int(params["n_out"])                  # n_action
    out_pad = params["w_heads"].shape[1]      # 128: lane-dense head / slab width
    assert 3 * O <= out_pad

    # --- batch block selection ---------------------------------------------
    # Compute per 128-row tile is far below the ~0.35 us per-grid-step cost, so
    # use big blocks to amortize launch overhead, but only take a block that
    # leaves >= 2 grid steps so the "parallel" batch axis can shard across
    # v7x's two TensorCores. Per-row VMEM is ~(F + A + out_pad) * 4 bytes.
    bb = B
    for cand in (2048, 1024, 512, 256, 128):
        if B >= 2 * cand:
            bb = cand
            break
    n_blocks = pl.cdiv(B, bb)
    Bp = n_blocks * bb
    if Bp != B:
        # Ragged batch: pad rows with zeros (sliced off below) to keep the
        # pipeline / TC sharding instead of one giant un-pipelined block.
        state = jnp.pad(state, ((0, Bp - B), (0, 0)))
        act = jnp.pad(act, ((0, Bp - B), (0, 0)))
    grid = (n_blocks,)

    z_arr = jnp.reshape(z.astype(jnp.float32), (1, 1))
    kernel = functools.partial(glucose_kernel, n_out=O)

    # Advisory cost so XLA schedules/overlaps this tiny latency-bound kernel
    # sensibly against surrounding rollout ops.
    cost = pl.CostEstimate(
        flops=int(2 * Bp * ((F + A) * H + H * out_pad)),
        transcendentals=int(3 * Bp * O),
        bytes_accessed=int(4 * (Bp * (F + A)                 # activations in
                                + (F + A) * H + H            # W1 + b1
                                + H * out_pad + out_pad      # heads + bias
                                + Bp * out_pad)),            # packed slab out
    )

    packed = pl.pallas_call(
        kernel,
        out_shape=jax.ShapeDtypeStruct((Bp, out_pad), jnp.float32),
        grid=grid,
        in_specs=[
            pl.BlockSpec((bb, F), lambda i: (i, 0)),            # extract_state
            pl.BlockSpec((bb, A), lambda i: (i, 0)),            # action
            pl.BlockSpec((F, H), lambda i: (0, 0)),             # W1 (state part)
            pl.BlockSpec((A, H), lambda i: (0, 0)),             # W1 (action part)
            pl.BlockSpec((1, H), lambda i: (0, 0)),             # b1
            pl.BlockSpec((H, out_pad), lambda i: (0, 0)),       # fused padded head W
            pl.BlockSpec((1, out_pad), lambda i: (0, 0)),       # fused padded head b
            pl.BlockSpec((1, 1), lambda i: (0, 0),
                         memory_space=pltpu.MemorySpace.SMEM),  # scalar z
        ],
        out_specs=pl.BlockSpec((bb, out_pad), lambda i: (i, 0)),
        compiler_params=pltpu.CompilerParams(
            dimension_semantics=("parallel",)),                 # shard batch on v7x
        cost_estimate=cost,
    )(state, act,
      params["w1_state"], params["w1_action"], params["b1"],
      params["w_heads"], params["b_heads"], z_arr)

    packed = packed[:B]
    cgm_mu = packed[:, 0:O]
    cgm_sigma = packed[:, O:2 * O]
    cgm = packed[:, 2 * O:3 * O]
    return cgm_mu, cgm_sigma, cgm


def init_params(key, feature_extractor, n_action, last_hidden, head_pad=128):
    """Deterministic init matching nn.Linear default + NormedLinear(scale=0.1).

    The mu / sigma head weights are fused along the output axis and zero-padded
    to `head_pad` (=128) lanes so the head matmul result and the kernel's
    packed output slab are full lane-dense vregs.
    """
    def linear_init(k, fan_in, fan_out):
        k1, k2 = jax.random.split(k)
        bound = 1.0 / math.sqrt(fan_in)
        w = jax.random.uniform(k1, (fan_out, fan_in), jnp.float32, -bound, bound)
        b = jax.random.uniform(k2, (fan_out,), jnp.float32, -bound, bound)
        return w, b

    k1, k2, k3 = jax.random.split(key, 3)
    F, A, H, O = feature_extractor, n_action, last_hidden, n_action
    assert 3 * O <= head_pad, "packed output slab needs 3*n_action <= 128 lanes"

    w1, b1 = linear_init(k1, F + A, H)                     # (H, F+A)

    wmu, bmu = linear_init(k2, H, O)                       # (O, H)
    wmu = wmu * (0.1 / jnp.linalg.norm(wmu, axis=1, keepdims=True))    # NormedLinear

    wsig, bsig = linear_init(k3, H, O)
    wsig = wsig * (0.1 / jnp.linalg.norm(wsig, axis=1, keepdims=True))  # NormedLinear

    w_heads = jnp.zeros((H, head_pad), jnp.float32)
    w_heads = w_heads.at[:, 0:O].set(wmu.T).at[:, O:2 * O].set(wsig.T)
    b_heads = jnp.zeros((head_pad,), jnp.float32)
    b_heads = b_heads.at[0:O].set(bmu).at[O:2 * O].set(bsig)

    # Store transposed (in, out); split W1 by input (state / action) so the
    # kernel never needs a concatenated [state, action] buffer.
    return {
        "w1_state": w1[:, :F].T,                           # (F, H)
        "w1_action": w1[:, F:].T,                          # (A, H)
        "b1": b1[None, :],                                 # (1, H)
        "w_heads": w_heads,                                # (H, 128) zero-padded
        "b_heads": b_heads[None, :],                       # (1, 128) zero-padded
        "n_out": O,
    }


if __name__ == "__main__":
    # Small, self-consistent config:
    #   n_rnn_hidden=16, n_rnn_layers=1, rnn_directions=1 -> feature_extractor=16
    #   n_action=2, batch=2
    n_hidden, n_layers, directions = 16, 1, 1
    feature_extractor = n_hidden * n_layers * directions
    last_hidden = feature_extractor
    n_action = 2
    batch = 2

    key = jax.random.PRNGKey(0)
    k_state, k_action, k_params, k_z = jax.random.split(key, 4)

    extract_state = jax.random.normal(k_state, (batch, feature_extractor), jnp.float32)
    action = jax.random.normal(k_action, (batch, n_action), jnp.float32)
    params = init_params(k_params, feature_extractor, n_action, last_hidden)
    z = jax.random.normal(k_z, ())   # Normal(0,1).sample() scalar, as in PyTorch

    mu, sig, cgm = glucose_forward(extract_state, action, params, z)
    jax.block_until_ready((mu, sig, cgm))

    # Pure-JAX reference check (un-fused semantics)
    O = n_action
    xa = jnp.concatenate([extract_state, action], axis=1)
    w1_full = jnp.concatenate([params["w1_state"], params["w1_action"]], axis=0)
    h_ref = jax.nn.relu(xa @ w1_full + params["b1"])
    heads = h_ref @ params["w_heads"] + params["b_heads"]
    mu_ref = jnp.tanh(heads[:, :O])
    sig_ref = jax.nn.softplus(heads[:, O:2 * O] + 1e-5)
    cgm_ref = jnp.clip(mu_ref + sig_ref * z, -1.0, 1.0)

    assert jnp.allclose(mu, mu_ref, atol=1e-5)
    assert jnp.allclose(sig, sig_ref, atol=1e-5)
    assert jnp.allclose(cgm, cgm_ref, atol=1e-5)

    print("KERNEL_OK")
</pallas_src>

<mosaic_0001>
module attributes {stable_mosaic.version = 11 : i64} {
  func.func @glucose_kernel(%arg0: i32, %arg1: memref<2x16xf32, #tpu.memory_space<vmem>>, %arg2: memref<2x2xf32, #tpu.memory_space<vmem>>, %arg3: memref<16x16xf32, #tpu.memory_space<vmem>>, %arg4: memref<2x16xf32, #tpu.memory_space<vmem>>, %arg5: memref<1x16xf32, #tpu.memory_space<vmem>>, %arg6: memref<16x128xf32, #tpu.memory_space<vmem>>, %arg7: memref<1x128xf32, #tpu.memory_space<vmem>>, %arg8: memref<1x1xf32, #tpu.memory_space<smem>>, %arg9: memref<2x128xf32, #tpu.memory_space<vmem>>) attributes {dimension_semantics = [#tpu.dimension_semantics<parallel>], iteration_bounds = array<i64: 1>, scalar_prefetch = 0 : i64, scratch_operands = 0 : i64, tpu.core_type = #tpu.core_type<tc>, window_params = [{transform_indices = @transform_0, window_bounds = array<i64: 2, 16>}, {transform_indices = @transform_1, window_bounds = array<i64: 2, 2>}, {pipeline_mode = #tpu.pipeline_mode<synchronous>, transform_indices = @transform_2, window_bounds = array<i64: 16, 16>}, {pipeline_mode = #tpu.pipeline_mode<synchronous>, transform_indices = @transform_3, window_bounds = array<i64: 2, 16>}, {pipeline_mode = #tpu.pipeline_mode<synchronous>, transform_indices = @transform_4, window_bounds = array<i64: 1, 16>}, {pipeline_mode = #tpu.pipeline_mode<synchronous>, transform_indices = @transform_5, window_bounds = array<i64: 16, 128>}, {pipeline_mode = #tpu.pipeline_mode<synchronous>, transform_indices = @transform_6, window_bounds = array<i64: 1, 128>}, {transform_indices = @transform_7, window_bounds = array<i64: 1, 1>}, {transform_indices = @transform_8, window_bounds = array<i64: 2, 128>}]} {
    %c0 = arith.constant 0 : index
    %c0_0 = arith.constant 0 : index
    %0 = vector.load %arg1[%c0, %c0_0] : memref<2x16xf32, #tpu.memory_space<vmem>>, vector<2x16xf32>
    %c0_1 = arith.constant 0 : index
    %c0_2 = arith.constant 0 : index
    %1 = vector.load %arg3[%c0_1, %c0_2] : memref<16x16xf32, #tpu.memory_space<vmem>>, vector<16x16xf32>
    %cst = arith.constant dense<0.000000e+00> : vector<2x16xf32>
    %2 = tpu.matmul %0, %1, %cst {dimension_numbers = #tpu.dot_dimension_numbers<[1], [0], [0], [1], [0, 0, 1, 1], [], []>} : vector<2x16xf32>, vector<16x16xf32>, vector<2x16xf32> -> vector<2x16xf32>
    %c0_3 = arith.constant 0 : index
    %c0_4 = arith.constant 0 : index
    %3 = vector.load %arg2[%c0_3, %c0_4] : memref<2x2xf32, #tpu.memory_space<vmem>>, vector<2x2xf32>
    %c0_5 = arith.constant 0 : index
    %c0_6 = arith.constant 0 : index
    %4 = vector.load %arg4[%c0_5, %c0_6] : memref<2x16xf32, #tpu.memory_space<vmem>>, vector<2x16xf32>
    %cst_7 = arith.constant dense<0.000000e+00> : vector<2x16xf32>
    %5 = tpu.matmul %3, %4, %cst_7 {dimension_numbers = #tpu.dot_dimension_numbers<[1], [0], [0], [1], [0, 0, 1, 1], [], []>} : vector<2x2xf32>, vector<2x16xf32>, vector<2x16xf32> -> vector<2x16xf32>
    %6 = arith.addf %2, %5 : vector<2x16xf32>
    %c0_8 = arith.constant 0 : index
    %c0_9 = arith.constant 0 : index
    %7 = vector.load %arg5[%c0_8, %c0_9] : memref<1x16xf32, #tpu.memory_space<vmem>>, vector<1x16xf32>
    %8 = vector.broadcast %7 : vector<1x16xf32> to vector<2x16xf32>
    %9 = arith.addf %6, %8 : vector<2x16xf32>
    %cst_10 = arith.constant 0.000000e+00 : f32
    %10 = vector.broadcast %cst_10 : f32 to vector<2x16xf32>
    %11 = arith.maximumf %9, %10 : vector<2x16xf32>
    %c0_11 = arith.constant 0 : index
    %c0_12 = arith.constant 0 : index
    %12 = vector.load %arg6[%c0_11, %c0_12] : memref<16x128xf32, #tpu.memory_space<vmem>>, vector<16x128xf32>
    %cst_13 = arith.constant dense<0.000000e+00> : vector<2x128xf32>
    %13 = tpu.matmul %11, %12, %cst_13 {dimension_numbers = #tpu.dot_dimension_numbers<[1], [0], [0], [1], [0, 0, 1, 1], [], []>} : vector<2x16xf32>, vector<16x128xf32>, vector<2x128xf32> -> vector<2x128xf32>
    %c0_14 = arith.constant 0 : index
    %c0_15 = arith.constant 0 : index
    %14 = vector.load %arg7[%c0_14, %c0_15] : memref<1x128xf32, #tpu.memory_space<vmem>>, vector<1x128xf32>
    %15 = vector.broadcast %14 : vector<1x128xf32> to vector<2x128xf32>
    %16 = arith.addf %13, %15 : vector<2x128xf32>
    %17 = vector.extract_strided_slice %16 {offsets = [0, 0], sizes = [2, 2], strides = [1, 1]} : vector<2x128xf32> to vector<2x2xf32>
    %18 = math.tanh %17 : vector<2x2xf32>
    %19 = vector.extract_strided_slice %16 {offsets = [0, 2], sizes = [2, 2], strides = [1, 1]} : vector<2x128xf32> to vector<2x2xf32>
    %cst_16 = arith.constant 9.99999974E-6 : f32
    %20 = vector.broadcast %cst_16 : f32 to vector<2x2xf32>
    %21 = arith.addf %19, %20 : vector<2x2xf32>
    %cst_17 = arith.constant 0.000000e+00 : f32
    %22 = vector.broadcast %cst_17 : f32 to vector<2x2xf32>
    %23 = arith.maximumf %21, %22 : vector<2x2xf32>
    %24 = math.absf %21 : vector<2x2xf32>
    %cst_18 = arith.constant 0.000000e+00 : f32
    %25 = vector.broadcast %cst_18 : f32 to vector<2x2xf32>
    %26 = arith.subf %25, %24 : vector<2x2xf32>
    %27 = math.exp %26 : vector<2x2xf32>
    %28 = math.log1p %27 : vector<2x2xf32>
    %29 = arith.addf %23, %28 : vector<2x2xf32>
    %c0_19 = arith.constant 0 : index
    %c0_20 = arith.constant 0 : index
    %30 = memref.load %arg8[%c0_19, %c0_20] : memref<1x1xf32, #tpu.memory_space<smem>>
    %31 = vector.broadcast %30 : f32 to vector<2x2xf32>
    %32 = arith.mulf %29, %31 : vector<2x2xf32>
    %33 = arith.addf %18, %32 : vector<2x2xf32>
    %cst_21 = arith.constant -1.000000e+00 : f32
    %cst_22 = arith.constant 1.000000e+00 : f32
    %34 = vector.broadcast %cst_21 : f32 to vector<2x2xf32>
    %35 = arith.maximumf %34, %33 : vector<2x2xf32>
    %36 = vector.broadcast %cst_22 : f32 to vector<2x2xf32>
    %37 = arith.minimumf %36, %35 : vector<2x2xf32>
    %cst_23 = arith.constant 0.000000e+00 : f32
    %38 = vector.broadcast %cst_23 : f32 to vector<2x122xf32>
    %39 = tpu.concatenate %18, %29, %37, %38 in 1 : vector<2x2xf32>, vector<2x2xf32>, vector<2x2xf32>, vector<2x122xf32> -> vector<2x128xf32>
    %c0_24 = arith.constant 0 : index
    %c0_25 = arith.constant 0 : index
    %40 = vector.load %arg9[%c0_24, %c0_25] : memref<2x128xf32, #tpu.memory_space<vmem>>, vector<2x128xf32>
    tpu.vector_store %arg9[%c0_24, %c0_25], %39 {strides = array<i32>} : memref<2x128xf32, #tpu.memory_space<vmem>>, vector<2x128xf32>,
    return
  }
  func.func @transform_0(%arg0: i32) -> (i32, i32) {
    %c0_i32 = arith.constant 0 : i32
    %c0_i32_0 = arith.constant 0 : i32
    return %arg0, %c0_i32 : i32, i32
  }
  func.func @transform_1(%arg0: i32) -> (i32, i32) {
    %c0_i32 = arith.constant 0 : i32
    %c0_i32_0 = arith.constant 0 : i32
    return %arg0, %c0_i32 : i32, i32
  }
  func.func @transform_2(%arg0: i32) -> (i32, i32) {
    %c0_i32 = arith.constant 0 : i32
    %c0_i32_0 = arith.constant 0 : i32
    %c0_i32_1 = arith.constant 0 : i32
    return %c0_i32, %c0_i32_0 : i32, i32
  }
  func.func @transform_3(%arg0: i32) -> (i32, i32) {
    %c0_i32 = arith.constant 0 : i32
    %c0_i32_0 = arith.constant 0 : i32
    %c0_i32_1 = arith.constant 0 : i32
    return %c0_i32, %c0_i32_0 : i32, i32
  }
  func.func @transform_4(%arg0: i32) -> (i32, i32) {
    %c0_i32 = arith.constant 0 : i32
    %c0_i32_0 = arith.constant 0 : i32
    %c0_i32_1 = arith.constant 0 : i32
    return %c0_i32, %c0_i32_0 : i32, i32
  }
  func.func @transform_5(%arg0: i32) -> (i32, i32) {
    %c0_i32 = arith.constant 0 : i32
    %c0_i32_0 = arith.constant 0 : i32
    %c0_i32_1 = arith.constant 0 : i32
    return %c0_i32, %c0_i32_0 : i32, i32
  }
  func.func @transform_6(%arg0: i32) -> (i32, i32) {
    %c0_i32 = arith.constant 0 : i32
    %c0_i32_0 = arith.constant 0 : i32
    %c0_i32_1 = arith.constant 0 : i32
    return %c0_i32, %c0_i32_0 : i32, i32
  }
  func.func @transform_7(%arg0: i32) -> (i32, i32) {
    %c0_i32 = arith.constant 0 : i32
    %c0_i32_0 = arith.constant 0 : i32
    %c0_i32_1 = arith.constant 0 : i32
    return %c0_i32, %c0_i32_0 : i32, i32
  }
  func.func @transform_8(%arg0: i32) -> (i32, i32) {
    %c0_i32 = arith.constant 0 : i32
    %c0_i32_0 = arith.constant 0 : i32
    return %arg0, %c0_i32 : i32, i32
  }
}

</mosaic_0001>

<bundles_post_ra>
// kernel: tpu_custom_call.1
= control target key start
LH: loop header
LB: loop body
LE: loop exit
PB: predicated region body
PF: predicated region fallthrough
CT: control target
= control target key end

     0   :  { %14 = vsyncpa [#allocation4], 0  ;;  %s603_s0 = inlined_call_operand.vmem [shape: f32[2,16], index: 0, kind: input, shape index: {}]   ;;  %s604_s1 = inlined_call_operand.vmem [shape: f32[2,2], index: 1, kind: input, shape index: {}]   ;;  %s605_s2 = inlined_call_operand.hbm [shape: f32[16,16], index: 2, kind: input, shape index: {}]   ;;  %s606_s3 = inlined_call_operand.vmem [shape: f32[2,16], index: 3, kind: input, shape index: {}]   ;;  %s607_s4 = inlined_call_operand.hbm [shape: f32[1,16], index: 4, kind: input, shape index: {}]   ;;  %s608_s5 = inlined_call_operand.vmem [shape: f32[16,128], index: 5, kind: input, shape index: {}]   ;;  %s609_s6 = inlined_call_operand.vmem [shape: f32[1,128], index: 6, kind: input, shape index: {}]   ;;  %s610_s7 = inlined_call_operand.<no memory space> [shape: f32[1,1], index: 7, kind: input, shape index: {}]   ;;  %s611_s8 = inlined_call_operand.hbm [shape: f32[2,128], index: 8, kind: output, shape index: {}]  }
   0x1   :  { %15 = vsyncpa [#allocation7], 0 }
   0x2   :  { %16 = vsyncpa [#allocation5], 0  ;;  %s486_s27 = smov [#allocation3]   ;;  %s414_s9 = scalar_lea.hbm %s605_s2, 256 }
   0x3   :  { %s26_s28 = sshll.u32 %s486_s27, 4  ;;  %p415_p0 = scmp.ne.s32.totalorder %s605_s2, %s414_s9  ;;  %s27_s28 = int_to_ptr.vmem [resolvable:$true] %s26_s28 }
   0x4   :  { %p418_p1 = scmp.lt.u32.totalorder %s414_s9, %s605_s2 }
   0x6   :  { %p420_p2 = pnand %p418_p1, %p415_p0 }
   0x8   :  { %423 = shalt.err (!%p420_p2)
}
   0x9   :  { %s424_s14 = scalar_lea.vmem %s27_s28, 256  ;;  %p429_p4 = scmp.lt.s32.totalorder %s27_s28, %s27_s28 }
   0xa   :  { %p425_p3 = scmp.ne.s32.totalorder %s27_s28, %s424_s14  ;;  %p430_p5 = scmp.lt.s32.totalorder %s424_s14, %s424_s14 }
   0xc   :  { %p431_p6 = por %p430_p5, %p429_p4 }
   0xe   :  { %p432_p7 = pnand %p431_p6, %p425_p3 }
  0x10   :  { %435 = shalt.err (!%p432_p7)
}
  0x11   :  { %s487_s15 = smov 128   ;;  %s488_s16 = smov 8  }
  0x12   :  { %32 = dma.hbm_to_vmem [thread:$0]  %s605_s2, 256, %s27_s28, [#allocation4], %s487_s15, %s487_s15, %s488_s16  }
  0x13   :  { %s489_s19 = smov [#allocation6]   ;;  %s436_s23 = scalar_lea.hbm %s607_s4, 16 }
  0x14   :  { %s41_s20 = sshll.u32 %s489_s19, 4  ;;  %p437_p8 = scmp.ne.s32.totalorder %s607_s4, %s436_s23  ;;  %s42_s20 = int_to_ptr.vmem [resolvable:$true] %s41_s20 }
  0x15   :  { %p440_p9 = scmp.lt.u32.totalorder %s436_s23, %s607_s4 }
  0x17   :  { %p442_p10 = pnand %p440_p9, %p437_p8 }
  0x19   :  { %445 = shalt.err (!%p442_p10)
}
  0x1a   :  { %s446_s29 = scalar_lea.vmem %s42_s20, 16  ;;  %s450_s2 = scalar_lea.vmem %s42_s20, 32 }
  0x1b   :  { %p447_p11 = scmp.ne.s32.totalorder %s42_s20, %s446_s29  ;;  %p451_p12 = scmp.lt.s32.totalorder %s42_s20, %s42_s20 }
  0x1c   :  { %p452_p13 = scmp.lt.s32.totalorder %s450_s2, %s446_s29 }
  0x1e   :  { %p453_p0 = por %p452_p13, %p451_p12 }
  0x20   :  { %p454_p1 = pnand %p453_p0, %p447_p11 }
  0x22   :  { %457 = shalt.err (!%p454_p1)
}
  0x23   :  { %44 = dma.hbm_to_vmem [thread:$0]  %s607_s4, 16, %s42_s20, [#allocation7]  }
  0x24   :  { %480 = dma.done.wait [#allocation4], 256  }
  0x25   :  { %481 = vsyncadd [#allocation4], 4294967040 }
  0x26   :  { %482 = dma.done.wait [#allocation7], 16  }
  0x27   :  { %483 = vsyncadd [#allocation7], 4294967280  ;;  %v490_v0 = vmov 0.0|0.0   ;;  %v491_v1 = vmov 0.0   ;;  %vm492_vm0 = vmmov 0   ;;  %vm66_vm1 = vcmask 1041408  }
  0x28   :  { %392 = vmatprep.subr.bf16.mxu1 %v490_v0  ;;  %373 = vmatprep.subr.mxu0 %v491_v1  ;;  %vm62_vm2 = vcmask 15360   ;;  %v58_v2 = vld [vmem:[#allocation3] sm:$0xff]  ;;  %v59_v3 = vld [vmem:[#allocation3 + $0x8] sm:$0xff]  ;;  %vm140_vm3 = vcmask 130048   ;;  %v361_v14 = vld [vmem:[#allocation6] ss:$0 sm:$0xff]  ;;  %v323_v37 = vstv %s610_s7 }
  0x29   :  { %375 = vmatprep.mubr.msk.f32.mxu0 %vm492_vm0, %v491_v1  ;;  %382 = vmatprep.mubr.msk.f32.mxu1 %vm492_vm0, %v491_v1  ;;  %v61_v4 = vld [vmem:[%s606_s3] sm:$0x3]  ;;  %v393_v5 = vpack.c.bf16 %v59_v3, %v58_v2  ;;  %v224_v9 = vld [vmem:[%s608_s5 + $0x8] sm:$0xff]  ;;  %s493_s17 = smov 126   ;;  %s494_s18 = smov 4   ;;  %vm337_vm5 = vcmask 31744  }
  0x2a   :  { %374 = vmatpush3.msk.msra.mxu0 %vm66_vm1, %v61_v4  ;;  %v60_v6 = vld [vmem:[%s604_s1] sm:$0x3]  ;;  %s495_s19 = smov [#allocation8]   ;;  %vm339_vm6 = vcmask 48128  }
  0x2b   :  { %376 = vmatmul.mubr.msk.f32.vlgmr.msra.gmra.mrb[0].mxu0 %vm62_vm2, %v60_v6  ;;  %395 = vmatprep.subr.bf16.mxu0 %v490_v0  ;;  %v57_v7 = vld [vmem:[%s603_s0] sm:$0x3]  ;;  %s348_s20 = sshll.u32 %s495_s19, 4  ;;  %s349_s20 = int_to_ptr.vmem [resolvable:$true] %s348_s20 }
  0x2c   :  { %394 = vmatpush3.bf16.msra.mxu1 %v393_v5  ;;  %389 = vmatprep.mubr.msk.f32.mxu0 %vm492_vm0, %v491_v1  ;;  %v223_v8 = vld [vmem:[%s608_s5] sm:$0xff]  ;;  %s458_s7 = scalar_lea.vmem %s349_s20, 32  ;;  %p463_p3 = scmp.lt.s32.totalorder %s349_s20, %s349_s20 }
  0x2d   :  { %v396_v10 = vpack.c.bf16 %v224_v9, %v223_v8  ;;  %v362_v19 = vld [vmem:[%s609_s6] ss:$0 sm:$0xff]  ;;  %p459_p2 = scmp.ne.s32.totalorder %s349_s20, %s458_s7  ;;  %p464_p4 = scmp.lt.s32.totalorder %s458_s7, %s458_s7 }
  0x2f   :  { %383 = vmatmul.mubr.msk.f32.vlgmr.msra.gmra.mrb[0].mxu1 %vm140_vm3, %v57_v7  ;;  %397 = vmatpush3.bf16.msra.mxu0 %v396_v10  ;;  %p465_p5 = por %p464_p4, %p463_p3 }
  0x31   :  { %p466_p6 = pnand %p465_p5, %p459_p2 }
  0xfe   :  { %v136_v11 = vpop.f32.mrb[0].mxu0 }
  0xff   :  { %v377_v12 = vpop.f32.mrb[1].mxu0 }
 0x102   :  { %v210_v13 = vpop.f32.mrb[0].mxu1 }
 0x103   :  { %v211_v15 = vadd.f32 %v210_v13, %v136_v11  ;;  %v384_v16 = vpop.f32.mrb[1].mxu1 }
 0x105   :  { %v221_v17 = vadd.f32 %v361_v14, %v211_v15 }
 0x107   :  { %v222_v18 = vmax.f32 %v221_v17, 0.0 }
 0x109   :  { %390 = vmatmul.mubr.msk.f32.vlgmr.msra.gmra.mrb[2].mxu0 %vm140_vm3, %v222_v18 }
 0x1dc   :  { %v301_v20 = vpop.f32.mrb[2].mxu0 }
 0x1dd   :  { %v302_v21 = vadd.f32 %v362_v19, %v301_v20  ;;  %v391_v22 = vpop.f32.mrb[3].mxu0 }
 0x1df   :  { %v306_v23 = vadd.f32 1e-05, %v302_v21 }
 0x1e1   :  { %v308_v24 = vand.u32 2147483647, %v306_v23  ;;  %v307_v35 = vmax.f32 %v306_v23, 0.0 }
 0x1e3   :  { %v309_v25 = vsub.f32 0.0, %v308_v24 }
 0x1e5   :  { %v310_v26 = vmul.f32 1.442695, %v309_v25 }
 0x1e7   :  { %408 = vpow2.f32 %v310_v26 }
 0x1f1   :  { %v409_v27 = vpop.eup %408 }
 0x1f2   :  { %v312_v28 = vadd.f32 1.0, %v409_v27  ;;  %v315_v29 = vmul.f32 -0.5, %v409_v27  ;;  %v318_v31 = vand.u32 2147483647, %v409_v27 }
 0x1f4   :  { %410 = vlog2.f32 %v312_v28  ;;  %v316_v30 = vadd.f32 1.0, %v315_v29  ;;  %vm319_vm4 = vcmp.lt.f32.partialorder %v318_v31, 0.0004427343 }
 0x1f5   :  { %412 = vtanh.f32 %v302_v21 }
 0x1f6   :  { %v317_v34 = vmul.f32 %v409_v27, %v316_v30 }
 0x1fe   :  { %v411_v32 = vpop.eup %410 }
 0x1ff   :  { %v314_v33 = vmul.f32 0.6931472, %v411_v32  ;;  %v413_v40 = vpop.eup %412 }
 0x201   :  { %v320_v36 = vsel %vm319_vm4, %v317_v34, %v314_v33 }
 0x202   :  { %v321_v38 = vadd.f32 %v320_v36, %v307_v35 }
 0x204   :  { %v324_v39 = vmul.f32 %v323_v37, %v321_v38  ;;  %v336_v44 = vsel %vm62_vm2, %v413_v40, %v321_v38 }
 0x206   :  { %326 = vrot.lane.b32.xlu0 %v324_v39, %s493_s17 }
 0x278   :  { %v327_v41 = vpop.permute.xlu0 %326 }
 0x279   :  { %v329_v42 = vadd.f32 %v413_v40, %v327_v41 }
 0x27b   :  { %v364_v43 = vclamps-f32 %v329_v42, 1.0 }
 0x27d   :  { %333 = vrot.lane.b32.xlu0 %v364_v43, %s494_s18 }
 0x2ef   :  { %v334_v45 = vpop.permute.xlu0 %333 }
 0x2f0   :  { %v338_v46 = vsel %vm337_vm5, %v336_v44, %v334_v45 }
 0x2f1   :  { %v340_v47 = vsel %vm339_vm6, %v338_v46, 0.0 }
 0x2f2   :  { %341 = vst [vmem:[#allocation8] sm:$0x3] %v340_v47 }
 0x2f3   :  { %469 = shalt.err (!%p466_p6)
}
 0x2f4   :  { %s470_s23 = scalar_lea.hbm %s611_s8, 32 }
 0x2f5   :  { %p471_p7 = scmp.ne.s32.totalorder %s611_s8, %s470_s23  ;;  %p474_p8 = scmp.lt.u32.totalorder %s470_s23, %s611_s8 }
 0x2f7   :  { %p476_p9 = pnand %p474_p8, %p471_p7 }
 0x2f9   :  { %479 = shalt.err (!%p476_p9)
}
 0x2fa   :  { %351 = dma.vmem_to_hbm [thread:$0]  %s349_s20, 32, %s611_s8, [#allocation5]  }
 0x2fb   :  { %484 = dma.done.wait [#allocation5], 32  }
 0x2fc   :  { %485 = vsyncadd [#allocation5], 4294967264 }
 0x2fd   :  { %355 = vsyncpa [#allocation4], 1 }
 0x2fe   :  { %356 = vsyncpa [#allocation7], 1 }
 0x2ff   :  { %357 = vsyncpa [#allocation5], 1 }

</bundles_post_ra>
